<compile_context>
chip_gen: v5e
topology: v5e:2x2
jax: 0.10.0
libtpu: 0.0.40
codegen_flags: <defaults>
</compile_context>

<pallas_src>
import math

import jax
import jax.numpy as jnp
from jax.experimental import pallas as pl
from jax.experimental.pallas import tpu as pltpu


def _moore_lstm_kernel(tok_ref,                     # VMEM (B, 1) int32
                       h_ref, c_ref,                # VMEM (L, B, H)
                       emb_ref,                     # VMEM (V, H)
                       wih_ref, whh_ref,            # VMEM (L, H, 4*GP)  W_ih^T / W_hh^T
                       b_ref,                       # VMEM (L, 1, 4*GP)  b_ih + b_hh
                       h_out_ref, c_out_ref):       # VMEM (L, B, H)
    L, B, H = h_ref.shape
    V = emb_ref.shape[0]
    GP = wih_ref.shape[-1] // 4                     # 128-lane padded gate width

    # ---- Embedding lookup as a one-hot matmul (MXU is essentially idle here).
    # TODO(synk): for a large vocabulary keep the table in HBM (pl.ANY) and
    # DMA-gather the needed rows instead of holding the whole table in VMEM.
    tok = tok_ref[...]                                          # (B, 1) int32
    iota_v = jax.lax.broadcasted_iota(jnp.int32, (B, V), 1)     # (B, V)
    one_hot = (iota_v == tok).astype(jnp.float32)               # (B, V)
    x = jnp.dot(one_hot, emb_ref[...],
                preferred_element_type=jnp.float32)             # (B, H)

    # ---- Statically unrolled layer recurrence (L is tiny and static).
    for l in range(L):
        h = h_ref[l]                                # (B, H)
        c = c_ref[l]                                # (B, H)
        # Two accumulating MXU dots per layer (no lane-concat on the serial
        # recurrence path): x @ W_ih^T + h @ W_hh^T + (b_ih + b_hh).
        gates = (jnp.dot(x, wih_ref[l], preferred_element_type=jnp.float32)
                 + jnp.dot(h, whh_ref[l], preferred_element_type=jnp.float32)
                 + b_ref[l])                        # (B, 4*GP), order [i|f|g|o]

        # 128-aligned gate slices (offsets 0 / GP / 2GP / 3GP).
        i_g = jax.nn.sigmoid(gates[:, 0 * GP:0 * GP + H])
        f_g = jax.nn.sigmoid(gates[:, 1 * GP:1 * GP + H])
        g_g = jnp.tanh(gates[:, 2 * GP:2 * GP + H])
        o_g = jax.nn.sigmoid(gates[:, 3 * GP:3 * GP + H])

        c_new = f_g * c + i_g * g_g
        h_new = o_g * jnp.tanh(c_new)

        h_out_ref[l] = h_new.astype(h_out_ref.dtype)
        c_out_ref[l] = c_new.astype(c_out_ref.dtype)
        x = h_new                                   # feeds layer l+1


def _lstm_embed_step(tokens, hidden, cell, emb, w_ih_t, w_hh_t, bias):
    """Embedding lookup + one multi-layer LSTM time-step in one pallas_call.

    tokens: (B,) int32           hidden/cell: (L, B, H) f32
    emb:    (V, H) f32           w_ih_t/w_hh_t: (L, H, 4*GP) f32
    bias:   (L, 1, 4*GP) f32
    Returns (h_new, c_new), each (L, B, H) f32.
    """
    L, B, H = hidden.shape
    V = emb.shape[0]
    GP = w_ih_t.shape[-1] // 4

    tok2d = tokens.reshape(B, 1).astype(jnp.int32)

    h_new, c_new = pl.pallas_call(
        _moore_lstm_kernel,
        out_shape=(jax.ShapeDtypeStruct((L, B, H), jnp.float32),
                   jax.ShapeDtypeStruct((L, B, H), jnp.float32)),
        grid=(1,),                                               # whole problem in VMEM
        in_specs=[
            pl.BlockSpec((B, 1), lambda i: (0, 0)),              # tokens
            pl.BlockSpec((L, B, H), lambda i: (0, 0, 0)),        # hidden
            pl.BlockSpec((L, B, H), lambda i: (0, 0, 0)),        # cell
            pl.BlockSpec((V, H), lambda i: (0, 0)),              # embedding table
            pl.BlockSpec((L, H, 4 * GP), lambda i: (0, 0, 0)),   # W_ih^T (gate-padded)
            pl.BlockSpec((L, H, 4 * GP), lambda i: (0, 0, 0)),   # W_hh^T (gate-padded)
            pl.BlockSpec((L, 1, 4 * GP), lambda i: (0, 0, 0)),   # fused bias
        ],
        out_specs=[
            pl.BlockSpec((L, B, H), lambda i: (0, 0, 0)),        # h_new
            pl.BlockSpec((L, B, H), lambda i: (0, 0, 0)),        # c_new
        ],
        # In-place state update: hidden (operand 1) -> h_out, cell (operand 2)
        # -> c_out.  No scalar-prefetch operands, so the indices are unambiguous.
        input_output_aliases={1: 0, 2: 1},
        compiler_params=pltpu.CompilerParams(
            dimension_semantics=("arbitrary",)),
    )(tok2d, hidden, cell, emb, w_ih_t, w_hh_t, bias)
    return h_new, c_new


@jax.jit
def moore_machine_lstm_forward(params, x_tokens, hidden, cell):
    """Full forward pass of MooreMachineLSTM (embedding + LSTM single step)."""
    # TODO(synk): if this is driven over a token sequence, move the time loop
    # into the kernel (T grid axis, constant index_maps for weights, h/c in
    # VMEM scratch) so weights stay VMEM-resident across steps.
    h_new, c_new = _lstm_embed_step(
        x_tokens.astype(jnp.int32), hidden, cell,
        params["embedding"], params["w_ih_t"], params["w_hh_t"], params["bias"])
    out = h_new[-1]          # lstm output (B, 1, H) reshaped to (B, H)
    return out, (h_new, c_new)


def _pad_gate_cols(m, H, GP):
    """Pad each of the 4 gate column blocks of width H out to width GP."""
    R = m.shape[0]
    m = m.reshape(R, 4, H)
    m = jnp.pad(m, ((0, 0), (0, 0), (0, GP - H)))
    return m.reshape(R, 4 * GP)


def init_params(key, input_size, hidden_size, num_layers, num_classes):
    assert input_size == hidden_size, "module is only shape-consistent when equal"
    H = hidden_size
    GP = ((H + 127) // 128) * 128          # 128-lane padded gate width
    k = 1.0 / math.sqrt(H)
    keys = jax.random.split(key, 4 * num_layers + 3)

    embedding = jax.random.normal(keys[0], (input_size, H), jnp.float32)

    w_ih_t, w_hh_t, bias = [], [], []
    for l in range(num_layers):
        kw0, kw1, kb0, kb1 = keys[1 + 4 * l: 1 + 4 * (l + 1)]
        # PyTorch layout: W_ih_l (4H, in), W_hh_l (4H, H), gate order [i|f|g|o].
        w_ih = jax.random.uniform(kw0, (4 * H, H), jnp.float32, -k, k)
        w_hh = jax.random.uniform(kw1, (4 * H, H), jnp.float32, -k, k)
        b_ih = jax.random.uniform(kb0, (4 * H,), jnp.float32, -k, k)
        b_hh = jax.random.uniform(kb1, (4 * H,), jnp.float32, -k, k)
        # Transpose to (H, 4H), pad each gate block to GP lanes -> (H, 4*GP).
        w_ih_t.append(_pad_gate_cols(w_ih.T, H, GP))
        w_hh_t.append(_pad_gate_cols(w_hh.T, H, GP))
        bias.append(_pad_gate_cols((b_ih + b_hh)[None, :], H, GP))  # (1, 4*GP)

    # fc exists in __init__ but is unused in forward(); kept for fidelity.
    fc_w = jax.random.uniform(keys[-2], (num_classes, H), jnp.float32, -k, k)
    fc_b = jax.random.uniform(keys[-1], (num_classes,), jnp.float32, -k, k)

    return {
        "embedding": embedding,
        "w_ih_t": jnp.stack(w_ih_t),   # (L, H, 4*GP)
        "w_hh_t": jnp.stack(w_hh_t),   # (L, H, 4*GP)
        "bias": jnp.stack(bias),       # (L, 1, 4*GP)
        "fc_w": fc_w, "fc_b": fc_b,
    }


def reference_forward(params, x_tokens, hidden, cell):
    """Pure-JAX reference of the same forward pass (for verification)."""
    x = jnp.take(params["embedding"], x_tokens, axis=0)
    L, B, H = hidden.shape
    GP = params["w_ih_t"].shape[-1] // 4
    h_out, c_out = [], []
    for l in range(L):
        gates = (jnp.dot(x, params["w_ih_t"][l], precision="highest")
                 + jnp.dot(hidden[l], params["w_hh_t"][l], precision="highest")
                 + params["bias"][l])
        i = jax.nn.sigmoid(gates[:, 0 * GP:0 * GP + H])
        f = jax.nn.sigmoid(gates[:, 1 * GP:1 * GP + H])
        g = jnp.tanh(gates[:, 2 * GP:2 * GP + H])
        o = jax.nn.sigmoid(gates[:, 3 * GP:3 * GP + H])
        c_new = f * cell[l] + i * g
        h_new = o * jnp.tanh(c_new)
        h_out.append(h_new)
        c_out.append(c_new)
        x = h_new
    h_out = jnp.stack(h_out)
    c_out = jnp.stack(c_out)
    return h_out[-1], (h_out, c_out)


if __name__ == "__main__":
    INPUT_SIZE = 32     # vocab size; must equal hidden_size (see note above)
    HIDDEN = 32
    LAYERS = 2
    CLASSES = 10
    BATCH = 8

    root = jax.random.PRNGKey(0)
    k_params, k_tokens = jax.random.split(root)

    params = init_params(k_params, INPUT_SIZE, HIDDEN, LAYERS, CLASSES)
    x_tokens = jax.random.randint(k_tokens, (BATCH,), 0, INPUT_SIZE, jnp.int32)

    # init_hidden(batch_size)
    hidden = jnp.zeros((LAYERS, BATCH, HIDDEN), jnp.float32)
    cell = jnp.zeros((LAYERS, BATCH, HIDDEN), jnp.float32)

    # Pure-JAX reference (computed first; inputs are never donated by the jit).
    out_ref, (h_ref, c_ref) = reference_forward(params, x_tokens, hidden, cell)

    out, (h_new, c_new) = moore_machine_lstm_forward(params, x_tokens, hidden, cell)
    out = jax.block_until_ready(out)
    h_new = jax.block_until_ready(h_new)
    c_new = jax.block_until_ready(c_new)

    assert out.shape == (BATCH, HIDDEN)
    assert h_new.shape == (LAYERS, BATCH, HIDDEN)
    assert c_new.shape == (LAYERS, BATCH, HIDDEN)
    assert jnp.allclose(out, out_ref, rtol=1e-3, atol=1e-3)
    assert jnp.allclose(h_new, h_ref, rtol=1e-3, atol=1e-3)
    assert jnp.allclose(c_new, c_ref, rtol=1e-3, atol=1e-3)

    print("KERNEL_OK")
</pallas_src>

<mosaic_0001>
module attributes {stable_mosaic.version = 11 : i64} {
  func.func @_moore_lstm_kernel(%arg0: i32, %arg1: memref<8x1xi32, #tpu.memory_space<vmem>>, %arg2: memref<2x8x32xf32, #tpu.memory_space<vmem>>, %arg3: memref<2x8x32xf32, #tpu.memory_space<vmem>>, %arg4: memref<32x32xf32, #tpu.memory_space<vmem>>, %arg5: memref<2x32x512xf32, #tpu.memory_space<vmem>>, %arg6: memref<2x32x512xf32, #tpu.memory_space<vmem>>, %arg7: memref<2x1x512xf32, #tpu.memory_space<vmem>>, %arg8: memref<2x8x32xf32, #tpu.memory_space<vmem>>, %arg9: memref<2x8x32xf32, #tpu.memory_space<vmem>>) attributes {dimension_semantics = [#tpu.dimension_semantics<arbitrary>], iteration_bounds = array<i64: 1>, scalar_prefetch = 0 : i64, scratch_operands = 0 : i64, tpu.core_type = #tpu.core_type<tc>, window_params = [{pipeline_mode = #tpu.pipeline_mode<synchronous>, transform_indices = @transform_0, window_bounds = array<i64: 8, 1>}, {pipeline_mode = #tpu.pipeline_mode<synchronous>, transform_indices = @transform_1, window_bounds = array<i64: 2, 8, 32>}, {pipeline_mode = #tpu.pipeline_mode<synchronous>, transform_indices = @transform_2, window_bounds = array<i64: 2, 8, 32>}, {pipeline_mode = #tpu.pipeline_mode<synchronous>, transform_indices = @transform_3, window_bounds = array<i64: 32, 32>}, {pipeline_mode = #tpu.pipeline_mode<synchronous>, transform_indices = @transform_4, window_bounds = array<i64: 2, 32, 512>}, {pipeline_mode = #tpu.pipeline_mode<synchronous>, transform_indices = @transform_5, window_bounds = array<i64: 2, 32, 512>}, {pipeline_mode = #tpu.pipeline_mode<synchronous>, transform_indices = @transform_6, window_bounds = array<i64: 2, 1, 512>}, {pipeline_mode = #tpu.pipeline_mode<synchronous>, transform_indices = @transform_7, window_bounds = array<i64: 2, 8, 32>}, {pipeline_mode = #tpu.pipeline_mode<synchronous>, transform_indices = @transform_8, window_bounds = array<i64: 2, 8, 32>}]} {
    %c0 = arith.constant 0 : index
    %c0_0 = arith.constant 0 : index
    %0 = vector.load %arg1[%c0, %c0_0] : memref<8x1xi32, #tpu.memory_space<vmem>>, vector<8x1xi32>
    %1 = tpu.iota {dimensions = array<i32: 1>} : vector<8x32xi32>
    %2 = vector.broadcast %0 : vector<8x1xi32> to vector<8x32xi32>
    %3 = arith.cmpi eq, %1, %2 : vector<8x32xi32>
    %4 = arith.extui %3 : vector<8x32xi1> to vector<8x32xi32>
    %5 = arith.sitofp %4 : vector<8x32xi32> to vector<8x32xf32>
    %c0_1 = arith.constant 0 : index
    %c0_2 = arith.constant 0 : index
    %6 = vector.load %arg4[%c0_1, %c0_2] : memref<32x32xf32, #tpu.memory_space<vmem>>, vector<32x32xf32>
    %cst = arith.constant dense<0.000000e+00> : vector<8x32xf32>
    %7 = tpu.matmul %5, %6, %cst {dimension_numbers = #tpu.dot_dimension_numbers<[1], [0], [0], [1], [0, 0, 1, 1], [], []>} : vector<8x32xf32>, vector<32x32xf32>, vector<8x32xf32> -> vector<8x32xf32>
    %c0_3 = arith.constant 0 : index
    %c0_4 = arith.constant 0 : index
    %c0_5 = arith.constant 0 : index
    %8 = vector.load %arg2[%c0_3, %c0_4, %c0_5] : memref<2x8x32xf32, #tpu.memory_space<vmem>>, vector<1x8x32xf32>
    %9 = vector.shape_cast %8 : vector<1x8x32xf32> to vector<8x32xf32>
    %c0_6 = arith.constant 0 : index
    %c0_7 = arith.constant 0 : index
    %c0_8 = arith.constant 0 : index
    %10 = vector.load %arg3[%c0_6, %c0_7, %c0_8] : memref<2x8x32xf32, #tpu.memory_space<vmem>>, vector<1x8x32xf32>
    %11 = vector.shape_cast %10 : vector<1x8x32xf32> to vector<8x32xf32>
    %c0_9 = arith.constant 0 : index
    %c0_10 = arith.constant 0 : index
    %c0_11 = arith.constant 0 : index
    %12 = vector.load %arg5[%c0_9, %c0_10, %c0_11] : memref<2x32x512xf32, #tpu.memory_space<vmem>>, vector<1x32x512xf32>
    %13 = vector.shape_cast %12 : vector<1x32x512xf32> to vector<32x512xf32>
    %cst_12 = arith.constant dense<0.000000e+00> : vector<8x512xf32>
    %14 = tpu.matmul %7, %13, %cst_12 {dimension_numbers = #tpu.dot_dimension_numbers<[1], [0], [0], [1], [0, 0, 1, 1], [], []>} : vector<8x32xf32>, vector<32x512xf32>, vector<8x512xf32> -> vector<8x512xf32>
    %c0_13 = arith.constant 0 : index
    %c0_14 = arith.constant 0 : index
    %c0_15 = arith.constant 0 : index
    %15 = vector.load %arg6[%c0_13, %c0_14, %c0_15] : memref<2x32x512xf32, #tpu.memory_space<vmem>>, vector<1x32x512xf32>
    %16 = vector.shape_cast %15 : vector<1x32x512xf32> to vector<32x512xf32>
    %cst_16 = arith.constant dense<0.000000e+00> : vector<8x512xf32>
    %17 = tpu.matmul %9, %16, %cst_16 {dimension_numbers = #tpu.dot_dimension_numbers<[1], [0], [0], [1], [0, 0, 1, 1], [], []>} : vector<8x32xf32>, vector<32x512xf32>, vector<8x512xf32> -> vector<8x512xf32>
    %18 = arith.addf %14, %17 : vector<8x512xf32>
    %c0_17 = arith.constant 0 : index
    %c0_18 = arith.constant 0 : index
    %c0_19 = arith.constant 0 : index
    %19 = vector.load %arg7[%c0_17, %c0_18, %c0_19] : memref<2x1x512xf32, #tpu.memory_space<vmem>>, vector<1x1x512xf32>
    %20 = vector.shape_cast %19 : vector<1x1x512xf32> to vector<1x512xf32>
    %21 = vector.broadcast %20 : vector<1x512xf32> to vector<8x512xf32>
    %22 = arith.addf %18, %21 : vector<8x512xf32>
    %23 = vector.extract_strided_slice %22 {offsets = [0, 0], sizes = [8, 32], strides = [1, 1]} : vector<8x512xf32> to vector<8x32xf32>
    %24 = arith.negf %23 : vector<8x32xf32>
    %25 = math.exp %24 : vector<8x32xf32>
    %cst_20 = arith.constant 1.000000e+00 : f32
    %26 = vector.broadcast %cst_20 : f32 to vector<8x32xf32>
    %27 = arith.addf %26, %25 : vector<8x32xf32>
    %28 = arith.divf %26, %27 : vector<8x32xf32>
    %29 = vector.extract_strided_slice %22 {offsets = [0, 128], sizes = [8, 32], strides = [1, 1]} : vector<8x512xf32> to vector<8x32xf32>
    %30 = arith.negf %29 : vector<8x32xf32>
    %31 = math.exp %30 : vector<8x32xf32>
    %cst_21 = arith.constant 1.000000e+00 : f32
    %32 = vector.broadcast %cst_21 : f32 to vector<8x32xf32>
    %33 = arith.addf %32, %31 : vector<8x32xf32>
    %34 = arith.divf %32, %33 : vector<8x32xf32>
    %35 = vector.extract_strided_slice %22 {offsets = [0, 256], sizes = [8, 32], strides = [1, 1]} : vector<8x512xf32> to vector<8x32xf32>
    %36 = math.tanh %35 : vector<8x32xf32>
    %37 = vector.extract_strided_slice %22 {offsets = [0, 384], sizes = [8, 32], strides = [1, 1]} : vector<8x512xf32> to vector<8x32xf32>
    %38 = arith.negf %37 : vector<8x32xf32>
    %39 = math.exp %38 : vector<8x32xf32>
    %cst_22 = arith.constant 1.000000e+00 : f32
    %40 = vector.broadcast %cst_22 : f32 to vector<8x32xf32>
    %41 = arith.addf %40, %39 : vector<8x32xf32>
    %42 = arith.divf %40, %41 : vector<8x32xf32>
    %43 = arith.mulf %34, %11 : vector<8x32xf32>
    %44 = arith.mulf %28, %36 : vector<8x32xf32>
    %45 = arith.addf %43, %44 : vector<8x32xf32>
    %46 = math.tanh %45 : vector<8x32xf32>
    %47 = arith.mulf %42, %46 : vector<8x32xf32>
    %c0_23 = arith.constant 0 : index
    %c0_24 = arith.constant 0 : index
    %c0_25 = arith.constant 0 : index
    %48 = vector.load %arg8[%c0_23, %c0_24, %c0_25] : memref<2x8x32xf32, #tpu.memory_space<vmem>>, vector<1x8x32xf32>
    %49 = vector.shape_cast %48 : vector<1x8x32xf32> to vector<8x32xf32>
    %50 = vector.shape_cast %47 : vector<8x32xf32> to vector<1x8x32xf32>
    tpu.vector_store %arg8[%c0_23, %c0_24, %c0_25], %50 {strides = array<i32>} : memref<2x8x32xf32, #tpu.memory_space<vmem>>, vector<1x8x32xf32>,
    %c0_26 = arith.constant 0 : index
    %c0_27 = arith.constant 0 : index
    %c0_28 = arith.constant 0 : index
    %51 = vector.load %arg9[%c0_26, %c0_27, %c0_28] : memref<2x8x32xf32, #tpu.memory_space<vmem>>, vector<1x8x32xf32>
    %52 = vector.shape_cast %51 : vector<1x8x32xf32> to vector<8x32xf32>
    %53 = vector.shape_cast %45 : vector<8x32xf32> to vector<1x8x32xf32>
    tpu.vector_store %arg9[%c0_26, %c0_27, %c0_28], %53 {strides = array<i32>} : memref<2x8x32xf32, #tpu.memory_space<vmem>>, vector<1x8x32xf32>,
    %c1 = arith.constant 1 : index
    %c0_29 = arith.constant 0 : index
    %c0_30 = arith.constant 0 : index
    %54 = vector.load %arg2[%c1, %c0_29, %c0_30] : memref<2x8x32xf32, #tpu.memory_space<vmem>>, vector<1x8x32xf32>
    %55 = vector.shape_cast %54 : vector<1x8x32xf32> to vector<8x32xf32>
    %c1_31 = arith.constant 1 : index
    %c0_32 = arith.constant 0 : index
    %c0_33 = arith.constant 0 : index
    %56 = vector.load %arg3[%c1_31, %c0_32, %c0_33] : memref<2x8x32xf32, #tpu.memory_space<vmem>>, vector<1x8x32xf32>
    %57 = vector.shape_cast %56 : vector<1x8x32xf32> to vector<8x32xf32>
    %c1_34 = arith.constant 1 : index
    %c0_35 = arith.constant 0 : index
    %c0_36 = arith.constant 0 : index
    %58 = vector.load %arg5[%c1_34, %c0_35, %c0_36] : memref<2x32x512xf32, #tpu.memory_space<vmem>>, vector<1x32x512xf32>
    %59 = vector.shape_cast %58 : vector<1x32x512xf32> to vector<32x512xf32>
    %cst_37 = arith.constant dense<0.000000e+00> : vector<8x512xf32>
    %60 = tpu.matmul %47, %59, %cst_37 {dimension_numbers = #tpu.dot_dimension_numbers<[1], [0], [0], [1], [0, 0, 1, 1], [], []>} : vector<8x32xf32>, vector<32x512xf32>, vector<8x512xf32> -> vector<8x512xf32>
    %c1_38 = arith.constant 1 : index
    %c0_39 = arith.constant 0 : index
    %c0_40 = arith.constant 0 : index
    %61 = vector.load %arg6[%c1_38, %c0_39, %c0_40] : memref<2x32x512xf32, #tpu.memory_space<vmem>>, vector<1x32x512xf32>
    %62 = vector.shape_cast %61 : vector<1x32x512xf32> to vector<32x512xf32>
    %cst_41 = arith.constant dense<0.000000e+00> : vector<8x512xf32>
    %63 = tpu.matmul %55, %62, %cst_41 {dimension_numbers = #tpu.dot_dimension_numbers<[1], [0], [0], [1], [0, 0, 1, 1], [], []>} : vector<8x32xf32>, vector<32x512xf32>, vector<8x512xf32> -> vector<8x512xf32>
    %64 = arith.addf %60, %63 : vector<8x512xf32>
    %c1_42 = arith.constant 1 : index
    %c0_43 = arith.constant 0 : index
    %c0_44 = arith.constant 0 : index
    %65 = vector.load %arg7[%c1_42, %c0_43, %c0_44] : memref<2x1x512xf32, #tpu.memory_space<vmem>>, vector<1x1x512xf32>
    %66 = vector.shape_cast %65 : vector<1x1x512xf32> to vector<1x512xf32>
    %67 = vector.broadcast %66 : vector<1x512xf32> to vector<8x512xf32>
    %68 = arith.addf %64, %67 : vector<8x512xf32>
    %69 = vector.extract_strided_slice %68 {offsets = [0, 0], sizes = [8, 32], strides = [1, 1]} : vector<8x512xf32> to vector<8x32xf32>
    %70 = arith.negf %69 : vector<8x32xf32>
    %71 = math.exp %70 : vector<8x32xf32>
    %cst_45 = arith.constant 1.000000e+00 : f32
    %72 = vector.broadcast %cst_45 : f32 to vector<8x32xf32>
    %73 = arith.addf %72, %71 : vector<8x32xf32>
    %74 = arith.divf %72, %73 : vector<8x32xf32>
    %75 = vector.extract_strided_slice %68 {offsets = [0, 128], sizes = [8, 32], strides = [1, 1]} : vector<8x512xf32> to vector<8x32xf32>
    %76 = arith.negf %75 : vector<8x32xf32>
    %77 = math.exp %76 : vector<8x32xf32>
    %cst_46 = arith.constant 1.000000e+00 : f32
    %78 = vector.broadcast %cst_46 : f32 to vector<8x32xf32>
    %79 = arith.addf %78, %77 : vector<8x32xf32>
    %80 = arith.divf %78, %79 : vector<8x32xf32>
    %81 = vector.extract_strided_slice %68 {offsets = [0, 256], sizes = [8, 32], strides = [1, 1]} : vector<8x512xf32> to vector<8x32xf32>
    %82 = math.tanh %81 : vector<8x32xf32>
    %83 = vector.extract_strided_slice %68 {offsets = [0, 384], sizes = [8, 32], strides = [1, 1]} : vector<8x512xf32> to vector<8x32xf32>
    %84 = arith.negf %83 : vector<8x32xf32>
    %85 = math.exp %84 : vector<8x32xf32>
    %cst_47 = arith.constant 1.000000e+00 : f32
    %86 = vector.broadcast %cst_47 : f32 to vector<8x32xf32>
    %87 = arith.addf %86, %85 : vector<8x32xf32>
    %88 = arith.divf %86, %87 : vector<8x32xf32>
    %89 = arith.mulf %80, %57 : vector<8x32xf32>
    %90 = arith.mulf %74, %82 : vector<8x32xf32>
    %91 = arith.addf %89, %90 : vector<8x32xf32>
    %92 = math.tanh %91 : vector<8x32xf32>
    %93 = arith.mulf %88, %92 : vector<8x32xf32>
    %c1_48 = arith.constant 1 : index
    %c0_49 = arith.constant 0 : index
    %c0_50 = arith.constant 0 : index
    %94 = vector.load %arg8[%c1_48, %c0_49, %c0_50] : memref<2x8x32xf32, #tpu.memory_space<vmem>>, vector<1x8x32xf32>
    %95 = vector.shape_cast %94 : vector<1x8x32xf32> to vector<8x32xf32>
    %96 = vector.shape_cast %93 : vector<8x32xf32> to vector<1x8x32xf32>
    tpu.vector_store %arg8[%c1_48, %c0_49, %c0_50], %96 {strides = array<i32>} : memref<2x8x32xf32, #tpu.memory_space<vmem>>, vector<1x8x32xf32>,
    %c1_51 = arith.constant 1 : index
    %c0_52 = arith.constant 0 : index
    %c0_53 = arith.constant 0 : index
    %97 = vector.load %arg9[%c1_51, %c0_52, %c0_53] : memref<2x8x32xf32, #tpu.memory_space<vmem>>, vector<1x8x32xf32>
    %98 = vector.shape_cast %97 : vector<1x8x32xf32> to vector<8x32xf32>
    %99 = vector.shape_cast %91 : vector<8x32xf32> to vector<1x8x32xf32>
    tpu.vector_store %arg9[%c1_51, %c0_52, %c0_53], %99 {strides = array<i32>} : memref<2x8x32xf32, #tpu.memory_space<vmem>>, vector<1x8x32xf32>,
    return
  }
  func.func @transform_0(%arg0: i32) -> (i32, i32) {
    %c0_i32 = arith.constant 0 : i32
    %c0_i32_0 = arith.constant 0 : i32
    %c0_i32_1 = arith.constant 0 : i32
    return %c0_i32, %c0_i32_0 : i32, i32
  }
  func.func @transform_1(%arg0: i32) -> (i32, i32, i32) {
    %c0_i32 = arith.constant 0 : i32
    %c0_i32_0 = arith.constant 0 : i32
    %c0_i32_1 = arith.constant 0 : i32
    %c0_i32_2 = arith.constant 0 : i32
    return %c0_i32, %c0_i32_0, %c0_i32_1 : i32, i32, i32
  }
  func.func @transform_2(%arg0: i32) -> (i32, i32, i32) {
    %c0_i32 = arith.constant 0 : i32
    %c0_i32_0 = arith.constant 0 : i32
    %c0_i32_1 = arith.constant 0 : i32
    %c0_i32_2 = arith.constant 0 : i32
    return %c0_i32, %c0_i32_0, %c0_i32_1 : i32, i32, i32
  }
  func.func @transform_3(%arg0: i32) -> (i32, i32) {
    %c0_i32 = arith.constant 0 : i32
    %c0_i32_0 = arith.constant 0 : i32
    %c0_i32_1 = arith.constant 0 : i32
    return %c0_i32, %c0_i32_0 : i32, i32
  }
  func.func @transform_4(%arg0: i32) -> (i32, i32, i32) {
    %c0_i32 = arith.constant 0 : i32
    %c0_i32_0 = arith.constant 0 : i32
    %c0_i32_1 = arith.constant 0 : i32
    %c0_i32_2 = arith.constant 0 : i32
    return %c0_i32, %c0_i32_0, %c0_i32_1 : i32, i32, i32
  }
  func.func @transform_5(%arg0: i32) -> (i32, i32, i32) {
    %c0_i32 = arith.constant 0 : i32
    %c0_i32_0 = arith.constant 0 : i32
    %c0_i32_1 = arith.constant 0 : i32
    %c0_i32_2 = arith.constant 0 : i32
    return %c0_i32, %c0_i32_0, %c0_i32_1 : i32, i32, i32
  }
  func.func @transform_6(%arg0: i32) -> (i32, i32, i32) {
    %c0_i32 = arith.constant 0 : i32
    %c0_i32_0 = arith.constant 0 : i32
    %c0_i32_1 = arith.constant 0 : i32
    %c0_i32_2 = arith.constant 0 : i32
    return %c0_i32, %c0_i32_0, %c0_i32_1 : i32, i32, i32
  }
  func.func @transform_7(%arg0: i32) -> (i32, i32, i32) {
    %c0_i32 = arith.constant 0 : i32
    %c0_i32_0 = arith.constant 0 : i32
    %c0_i32_1 = arith.constant 0 : i32
    %c0_i32_2 = arith.constant 0 : i32
    return %c0_i32, %c0_i32_0, %c0_i32_1 : i32, i32, i32
  }
  func.func @transform_8(%arg0: i32) -> (i32, i32, i32) {
    %c0_i32 = arith.constant 0 : i32
    %c0_i32_0 = arith.constant 0 : i32
    %c0_i32_1 = arith.constant 0 : i32
    %c0_i32_2 = arith.constant 0 : i32
    return %c0_i32, %c0_i32_0, %c0_i32_1 : i32, i32, i32
  }
}

</mosaic_0001>

<bundles_post_ra>
// kernel: moore_machine_lstm_forward.1
= control target key start
LH: loop header
LB: loop body
LE: loop exit
PB: predicated region body
PF: predicated region fallthrough
CT: control target
= control target key end

     0   :  { %14 = vsyncpa [#allocation3], 0  ;;  %s935_s0 = inlined_call_operand.vmem [shape: s32[8,1], index: 0, kind: input, shape index: {}]   ;;  %s936_s1 = inlined_call_operand.vmem [shape: f32[2,8,32], index: 1, kind: input, shape index: {}, may-alias: {1,7}]   ;;  %s937_s2 = inlined_call_operand.vmem [shape: f32[2,8,32], index: 2, kind: input, shape index: {}, may-alias: {2,8}]   ;;  %s938_s3 = inlined_call_operand.vmem [shape: f32[32,32], index: 3, kind: input, shape index: {}]   ;;  %s939_s4 = inlined_call_operand.hbm [shape: f32[2,32,512], index: 4, kind: input, shape index: {}]   ;;  %s940_s5 = inlined_call_operand.hbm [shape: f32[2,32,512], index: 5, kind: input, shape index: {}]   ;;  %s941_s6 = inlined_call_operand.vmem [shape: f32[2,1,512], index: 6, kind: input, shape index: {}]   ;;  %s942_s7 = inlined_call_operand.vmem [shape: f32[2,8,32], index: 7, kind: output, shape index: {0}, may-alias: {1,7}]   ;;  %s943_s8 = inlined_call_operand.vmem [shape: f32[2,8,32], index: 8, kind: output, shape index: {1}, may-alias: {2,8}]  }
   0x1   :  { %s28_s29 = sshll.u32 %s939_s4, 4  ;;  %s29_s29 = int_to_ptr.hbm [resolvable:$true] %s28_s29 }
   0x2   :  { %15 = vsyncpa [#allocation5], 0  ;;  %s792_s30 = smov [#allocation2]   ;;  %s41_s12 = sshll.u32 %s940_s5, 4  ;;  %s42_s12 = int_to_ptr.hbm [resolvable:$true] %s41_s12 }
   0x3   :  { %s30_s9 = sshll.u32 %s792_s30, 4  ;;  %s793_s13 = smov 512   ;;  %s31_s9 = int_to_ptr.vmem [resolvable:$true] %s30_s9 }
   0x4   :  { %s794_s14 = smov 32   ;;  %s795_s15 = smov [#allocation4]  }
   0x5   :  { %36 = dma.hbm_to_vmem [thread:$0]  %s29_s29, 4096, %s31_s9, [#allocation3], %s793_s13, %s793_s13, %s794_s14  }
   0x6   :  { %s43_s16 = sshll.u32 %s795_s15, 4  ;;  %s44_s16 = int_to_ptr.vmem [resolvable:$true] %s43_s16 }
   0x7   :  { %49 = dma.hbm_to_vmem [thread:$0]  %s42_s12, 4096, %s44_s16, [#allocation5], %s793_s13, %s793_s13, %s794_s14  }
   0x8   :  { %788 = dma.done.wait [#allocation3], 4096  }
   0x9   :  { %789 = vsyncadd [#allocation3], 4294963200 }
   0xa   :  { %790 = dma.done.wait [#allocation5], 4096  }
   0xb   :  { %791 = vsyncadd [#allocation5], 4294963200  ;;  %v796_v0 = vmov 0   ;;  %v60_v1 = vld [vmem:[%s935_s0] sm:$0xff]  ;;  %v72_v2 = vld [vmem:[%s938_s3 + $0x18] sm:$0xff]  ;;  %vm73_vm0 = vcmask 261120   ;;  %v61_v33 = vlaneseq }
   0xc   :  { %707 = vset.pattern.permute.xlu0 %v796_v0  ;;  %v71_v3 = vld [vmem:[%s938_s3 + $0x10] sm:$0xff]  ;;  %89 = vmatpush.msra.mxu0 %v72_v2  ;;  %v70_v4 = vld [vmem:[%s938_s3 + $0x8] sm:$0xff]  ;;  %v69_v5 = vld [vmem:[%s938_s3] sm:$0xff]  ;;  %v797_v37 = vmov 0.0  }
   0xd   :  { %64 = vperm.xlu0 %707, %v60_v1   ;;  %v127_v6 = vld [vmem:[#allocation4 + $0x60] sm:$0xff]  ;;  %v128_v7 = vld [vmem:[#allocation4 + $0x68] sm:$0xff]  ;;  %v129_v8 = vld [vmem:[#allocation4 + $0x70] sm:$0xff]  ;;  %v62_v34 = vand.u32 127, %v61_v33 }
   0xe   :  { %90 = vmatpush.msra.mxu0 %v71_v3  ;;  %146 = vmatpush.msra.mxu1 %v127_v6  ;;  %v130_v9 = vld [vmem:[#allocation4 + $0x78] sm:$0xff]  ;;  %v123_v10 = vld [vmem:[#allocation4 + $0x40] sm:$0xff]  ;;  %v124_v11 = vld [vmem:[#allocation4 + $0x48] sm:$0xff] }
   0xf   :  { %166 = vmatpush.msra.mxu2 %v128_v7  ;;  %186 = vmatpush.msra.mxu3 %v129_v8  ;;  %v125_v12 = vld [vmem:[#allocation4 + $0x50] sm:$0xff]  ;;  %v126_v13 = vld [vmem:[#allocation4 + $0x58] sm:$0xff]  ;;  %v119_v14 = vld [vmem:[#allocation4 + $0x20] sm:$0xff] }
  0x10   :  { %91 = vmatpush.msra.mxu0 %v70_v4  ;;  %147 = vmatpush.msra.mxu1 %v123_v10  ;;  %v120_v15 = vld [vmem:[#allocation4 + $0x28] sm:$0xff]  ;;  %v121_v16 = vld [vmem:[#allocation4 + $0x30] sm:$0xff]  ;;  %v122_v17 = vld [vmem:[#allocation4 + $0x38] sm:$0xff] }
  0x11   :  { %167 = vmatpush.msra.mxu2 %v124_v11  ;;  %187 = vmatpush.msra.mxu3 %v125_v12  ;;  %v115_v18 = vld [vmem:[#allocation4] sm:$0xff]  ;;  %v116_v19 = vld [vmem:[#allocation4 + $0x8] sm:$0xff]  ;;  %v117_v20 = vld [vmem:[#allocation4 + $0x10] sm:$0xff] }
  0x12   :  { %92 = vmatpush.msra.mxu0 %v69_v5  ;;  %148 = vmatpush.msra.mxu1 %v119_v14  ;;  %v118_v21 = vld [vmem:[#allocation4 + $0x18] sm:$0xff]  ;;  %v97_v22 = vld [vmem:[%s936_s1] sm:$0xff]  ;;  %v112_v23 = vld [vmem:[#allocation2 + $0x68] sm:$0xff] }
  0x13   :  { %168 = vmatpush.msra.mxu2 %v120_v15  ;;  %188 = vmatpush.msra.mxu3 %v121_v16  ;;  %v111_v24 = vld [vmem:[#allocation2 + $0x60] sm:$0xff]  ;;  %v113_v25 = vld [vmem:[#allocation2 + $0x70] sm:$0xff]  ;;  %v108_v26 = vld [vmem:[#allocation2 + $0x48] sm:$0xff] }
  0x14   :  { %206 = vmatpush.msrb.mxu0 %v130_v9  ;;  %149 = vmatpush.msra.mxu1 %v115_v18  ;;  %v107_v27 = vld [vmem:[#allocation2 + $0x40] sm:$0xff]  ;;  %v109_v28 = vld [vmem:[#allocation2 + $0x50] sm:$0xff]  ;;  %v104_v29 = vld [vmem:[#allocation2 + $0x28] sm:$0xff] }
  0x15   :  { %169 = vmatpush.msra.mxu2 %v116_v19  ;;  %189 = vmatpush.msra.mxu3 %v117_v20  ;;  %v103_v30 = vld [vmem:[#allocation2 + $0x20] sm:$0xff]  ;;  %v105_v31 = vld [vmem:[#allocation2 + $0x30] sm:$0xff]  ;;  %v100_v32 = vld [vmem:[#allocation2 + $0x8] sm:$0xff] }
  0x16   :  { %207 = vmatpush.msrb.mxu0 %v126_v13  ;;  %674 = vmatmul.msk.f32.vlgmr.msra.gmra.mxu1 %vm73_vm0, %v97_v22  ;;  %v114_v36 = vld [vmem:[#allocation2 + $0x78] sm:$0xff]  ;;  %v99_v41 = vld [vmem:[#allocation2] sm:$0xff]  ;;  %v101_v42 = vld [vmem:[#allocation2 + $0x10] sm:$0xff] }
  0x17   :  { %675 = vmatmul.msk.f32.vlgmr.msra.gmra.mxu2 %vm73_vm0, %v97_v22  ;;  %676 = vmatmul.msk.f32.vlgmr.msra.gmra.mxu3 %vm73_vm0, %v97_v22  ;;  %v110_v39 = vld [vmem:[#allocation2 + $0x58] sm:$0xff]  ;;  %v879_v48 = vld [vmem:[%s941_s6] sm:$0xf]  ;;  %v411_v59 = vld [vmem:[#allocation4 + $0xe8] sm:$0xff] }
  0x18   :  { %208 = vmatpush.msrb.mxu0 %v122_v17  ;;  %249 = vmatpush.msrb.mxu2 %v112_v23  ;;  %v106_v40 = vld [vmem:[#allocation2 + $0x38] sm:$0xff]  ;;  %v299_v49 = vperm.slane %v879_v48, 0  ;;  %v302_v51 = vperm.slane %v879_v48, 3  ;;  %v300_v58 = vperm.slane %v879_v48, 1  ;;  %v410_v60 = vld [vmem:[#allocation4 + $0xe0] sm:$0xff]  ;;  %v412_v61 = vld [vmem:[#allocation4 + $0xf0] sm:$0xff] }
  0x19   :  { %229 = vmatpush.msrb.mxu1 %v111_v24  ;;  %269 = vmatpush.msrb.mxu3 %v113_v25  ;;  %v102_v43 = vld [vmem:[#allocation2 + $0x18] sm:$0xff]  ;;  %v407_v2 = vld [vmem:[#allocation4 + $0xc8] sm:$0xff]  ;;  %v406_v3 = vld [vmem:[#allocation4 + $0xc0] sm:$0xff] }
  0x1a   :  { %209 = vmatpush.msrb.mxu0 %v118_v21  ;;  %250 = vmatpush.msrb.mxu2 %v108_v26  ;;  %v413_v0 = vld [vmem:[#allocation4 + $0xf8] sm:$0xff]  ;;  %v408_v4 = vld [vmem:[#allocation4 + $0xd0] sm:$0xff]  ;;  %v403_v7 = vld [vmem:[#allocation4 + $0xa8] sm:$0xff] }
  0x1b   :  { %230 = vmatpush.msrb.mxu1 %v107_v27  ;;  %270 = vmatpush.msrb.mxu3 %v109_v28  ;;  %v409_v5 = vld [vmem:[#allocation4 + $0xd8] sm:$0xff]  ;;  %v402_v8 = vld [vmem:[#allocation4 + $0xa0] sm:$0xff]  ;;  %v404_v9 = vld [vmem:[#allocation4 + $0xb0] sm:$0xff] }
  0x1c   :  { %251 = vmatpush.msrb.mxu2 %v104_v29  ;;  %v405_v10 = vld [vmem:[#allocation4 + $0xb8] sm:$0xff]  ;;  %v399_v13 = vld [vmem:[#allocation4 + $0x88] sm:$0xff]  ;;  %v398_v14 = vld [vmem:[#allocation4 + $0x80] sm:$0xff] }
  0x1d   :  { %231 = vmatpush.msrb.mxu1 %v103_v30  ;;  %271 = vmatpush.msrb.mxu3 %v105_v31  ;;  %v400_v15 = vld [vmem:[#allocation4 + $0x90] sm:$0xff]  ;;  %v401_v16 = vld [vmem:[#allocation4 + $0x98] sm:$0xff]  ;;  %v685_v17 = vld [vmem:[%s936_s1 + $0x8] sm:$0xff] }
  0x1e   :  { %252 = vmatpush.msrb.mxu2 %v100_v32  ;;  %v394_v19 = vld [vmem:[#allocation2 + $0xe8] sm:$0xff]  ;;  %v393_v20 = vld [vmem:[#allocation2 + $0xe0] sm:$0xff]  ;;  %v395_v23 = vld [vmem:[#allocation2 + $0xf0] sm:$0xff] }
  0x1f   :  { %232 = vmatpush.msrb.mxu1 %v99_v41  ;;  %272 = vmatpush.msrb.mxu3 %v101_v42  ;;  %v396_v24 = vld [vmem:[#allocation2 + $0xf8] sm:$0xff]  ;;  %v390_v25 = vld [vmem:[#allocation2 + $0xc8] sm:$0xff]  ;;  %v389_v26 = vld [vmem:[#allocation2 + $0xc0] sm:$0xff] }
  0x20   :  { %449 = vmatpush.msra.mxu2 %v411_v59  ;;  %v391_v27 = vld [vmem:[#allocation2 + $0xd0] sm:$0xff]  ;;  %v392_v28 = vld [vmem:[#allocation2 + $0xd8] sm:$0xff]  ;;  %v386_v30 = vld [vmem:[#allocation2 + $0xa8] sm:$0xff] }
  0x21   :  { %429 = vmatpush.msra.mxu1 %v410_v60  ;;  %469 = vmatpush.msra.mxu3 %v412_v61  ;;  %v385_v31 = vld [vmem:[#allocation2 + $0xa0] sm:$0xff]  ;;  %v387_v32 = vld [vmem:[#allocation2 + $0xb0] sm:$0xff]  ;;  %v388_v33 = vld [vmem:[#allocation2 + $0xb8] sm:$0xff] }
  0x22   :  { %450 = vmatpush.msra.mxu2 %v407_v2 }
  0x23   :  { %430 = vmatpush.msra.mxu1 %v406_v3  ;;  %470 = vmatpush.msra.mxu3 %v408_v4 }
  0x24   :  { %451 = vmatpush.msra.mxu2 %v403_v7 }
  0x25   :  { %431 = vmatpush.msra.mxu1 %v402_v8  ;;  %471 = vmatpush.msra.mxu3 %v404_v9 }
  0x26   :  { %452 = vmatpush.msra.mxu2 %v399_v13 }
  0x27   :  { %432 = vmatpush.msra.mxu1 %v398_v14  ;;  %472 = vmatpush.msra.mxu3 %v400_v15 }
  0x7f   :  { %v65_v35 = vpop.permute.xlu0 %64 }
  0x80   :  { %vm66_vm1 = vcmp.eq.s32.totalorder %v62_v34, %v65_v35  ;;  %v382_v35 = vld [vmem:[#allocation2 + $0x88] sm:$0xff] }
  0x81   :  { %v672_v38 = vsel %vm66_vm1, 1.0, %v797_v37 }
  0x82   :  { %673 = vmatmul.msk.f32.vlgmr.msra.gmra.mxu0 %vm73_vm0, %v672_v38  ;;  %v383_v38 = vld [vmem:[#allocation2 + $0x90] sm:$0xff] }
  0x83   :  { %289 = vmatpush.msra.mxu0 %v114_v36  ;;  %v381_v36 = vld [vmem:[#allocation2 + $0x80] sm:$0xff] }
  0x85   :  { %290 = vmatpush.msra.mxu0 %v110_v39  ;;  %v384_v39 = vld [vmem:[#allocation2 + $0x98] sm:$0xff] }
  0x87   :  { %291 = vmatpush.msra.mxu0 %v106_v40 }
  0x89   :  { %292 = vmatpush.msra.mxu0 %v102_v43 }
  0x8a   :  { %677 = vmatmul.msk.f32.vlgmr.msrb.gmra.mxu0 %vm73_vm0, %v97_v22 }
  0x8b   :  { %489 = vmatpush.msrb.mxu0 %v413_v0  ;;  %v98_v0 = vld [vmem:[%s937_s2] sm:$0xff] }
  0x8d   :  { %490 = vmatpush.msrb.mxu0 %v409_v5 }
  0x8f   :  { %491 = vmatpush.msrb.mxu0 %v405_v10 }
  0x91   :  { %492 = vmatpush.msrb.mxu0 %v401_v16 }
  0x93   :  { %v151_v45 = vpop.f32.mrf.mxu1 }
  0x9a   :  { %v171_v47 = vpop.f32.mrf.mxu2  ;;  %v191_v11 = vpop.f32.mrf.mxu3 }
  0xff   :  { %v94_v44 = vpop.f32.mrf.mxu0 }
 0x100   :  { %678 = vmatmul.msk.f32.vlgmr.msrb.gmra.mxu1 %vm73_vm0, %v94_v44  ;;  %679 = vmatmul.msk.f32.vlgmr.msrb.gmra.mxu2 %vm73_vm0, %v94_v44 }
 0x101   :  { %680 = vmatmul.msk.f32.vlgmr.msrb.gmra.mxu3 %vm73_vm0, %v94_v44  ;;  %681 = vmatmul.msk.f32.vlgmr.msra.gmra.mxu0 %vm73_vm0, %v94_v44  ;;  %v301_v44 = vperm.slane %v879_v48, 2 }
 0x102   :  { %532 = vmatpush.msrb.mxu2 %v394_v19  ;;  %512 = vmatpush.msrb.mxu1 %v393_v20  ;;  %v695_v20 = vld [vmem:[%s941_s6 + $0x4] sm:$0xf] }
 0x103   :  { %552 = vmatpush.msrb.mxu3 %v395_v23  ;;  %572 = vmatpush.msra.mxu0 %v396_v24  ;;  %v586_v23 = vperm.slane %v695_v20, 3 }
 0x104   :  { %533 = vmatpush.msrb.mxu2 %v390_v25  ;;  %513 = vmatpush.msrb.mxu1 %v389_v26 }
 0x105   :  { %553 = vmatpush.msrb.mxu3 %v391_v27  ;;  %573 = vmatpush.msra.mxu0 %v392_v28 }
 0x106   :  { %534 = vmatpush.msrb.mxu2 %v386_v30  ;;  %514 = vmatpush.msrb.mxu1 %v385_v31  ;;  %v584_v30 = vperm.slane %v695_v20, 1 }
 0x107   :  { %v211_v46 = vpop.f32.mrf.mxu0  ;;  %554 = vmatpush.msrb.mxu3 %v387_v32  ;;  %574 = vmatpush.msra.mxu0 %v388_v33 }
 0x108   :  { %687 = vmatmul.msk.f32.vlgmr.msra.gmra.mxu1 %vm73_vm0, %v685_v17  ;;  %688 = vmatmul.msk.f32.vlgmr.msra.gmra.mxu2 %vm73_vm0, %v685_v17 }
 0x109   :  { %689 = vmatmul.msk.f32.vlgmr.msra.gmra.mxu3 %vm73_vm0, %v685_v17  ;;  %690 = vmatmul.msk.f32.vlgmr.msrb.gmra.mxu0 %vm73_vm0, %v685_v17 }
 0x10a   :  { %535 = vmatpush.msrb.mxu2 %v382_v35  ;;  %515 = vmatpush.msrb.mxu1 %v381_v36 }
 0x10b   :  { %555 = vmatpush.msrb.mxu3 %v383_v38  ;;  %575 = vmatpush.msra.mxu0 %v384_v39 }
 0x17d   :  { %v234_v50 = vpop.f32.mrf.mxu1 }
 0x17e   :  { %v235_v52 = vadd.f32 %v234_v50, %v151_v45  ;;  %v294_v53 = vpop.f32.mrf.mxu0 }
 0x17f   :  { %v295_v54 = vadd.f32 %v294_v53, %v211_v46 }
 0x180   :  { %v307_v55 = vadd.f32 %v299_v49, %v235_v52 }
 0x181   :  { %v310_v56 = vadd.f32 %v302_v51, %v295_v54 }
 0x182   :  { %v682_v57 = vmul.f32 -1.442695, %v307_v55 }
 0x183   :  { %v684_v62 = vmul.f32 -1.442695, %v310_v56  ;;  %v254_v63 = vpop.f32.mrf.mxu2 }
 0x184   :  { %708 = vpow2.f32 %v682_v57  ;;  %v255_v1 = vadd.f32 %v254_v63, %v171_v47  ;;  %v274_v40 = vpop.f32.mrf.mxu3 }
 0x185   :  { %710 = vpow2.f32 %v684_v62  ;;  %v275_v43 = vadd.f32 %v274_v40, %v191_v11  ;;  %v434_v17 = vpop.f32.mrf.mxu1 }
 0x186   :  { %v308_v6 = vadd.f32 %v300_v58, %v255_v1 }
 0x187   :  { %v309_v50 = vadd.f32 %v301_v44, %v275_v43 }
 0x188   :  { %v683_v12 = vmul.f32 -1.442695, %v308_v6 }
 0x18a   :  { %v709_v18 = vpop.eup %708  ;;  %712 = vpow2.f32 %v683_v12 }
 0x18b   :  { %v711_v21 = vpop.eup %710  ;;  %v887_v22 = vadd.f32 1.0, %v709_v18  ;;  %v494_v18 = vpop.f32.mrf.mxu0 }
 0x18c   :  { %v894_v29 = vadd.f32 1.0, %v711_v21  ;;  %v454_v19 = vpop.f32.mrf.mxu2  ;;  %v583_v21 = vperm.slane %v695_v20, 0  ;;  %v474_v35 = vpop.f32.mrf.mxu3 }
 0x18d   :  { %714 = vrcp.f32 %v887_v22  ;;  %v326_v54 = vand.u32 2147483648, %v887_v22  ;;  %vm320_vm3 = vweird.f32 %v887_v22  ;;  %v324_v56 = vand.u32 2147483647, %v887_v22 }
 0x18e   :  { %716 = vrcp.f32 %v894_v29  ;;  %v365_v10 = vand.u32 2147483648, %v894_v29  ;;  %vm359_vm11 = vweird.f32 %v894_v29  ;;  %v363_v11 = vand.u32 2147483647, %v894_v29 }
 0x18f   :  { %v327_v61 = vor.u32 1.1754944e-38, %v326_v54  ;;  %vm325_vm7 = vcmp.eq.f32.partialorder %v324_v56, 8.507059e+37 }
 0x190   :  { %v713_v34 = vpop.eup %712  ;;  %v366_v13 = vor.u32 1.1754944e-38, %v365_v10  ;;  %vm364_vm13 = vcmp.eq.f32.partialorder %v363_v11, 8.507059e+37 }
 0x191   :  { %v333_v37 = vadd.f32 1.0, %v713_v34 }
 0x193   :  { %v715_v41 = vpop.eup %714  ;;  %718 = vrcp.f32 %v333_v37  ;;  %v345_v57 = vand.u32 2147483648, %v333_v37  ;;  %v343_v59 = vand.u32 2147483647, %v333_v37  ;;  %vm339_vm6 = vweird.f32 %v333_v37 }
 0x194   :  { %v316_v42 = vmul.f32 %v715_v41, %v887_v22  ;;  %v717_v46 = vpop.eup %716  ;;  %vm321_vm2 = vweird.f32 %v715_v41  ;;  %720 = vtanh.f32 %v309_v50 }
 0x195   :  { %v355_v53 = vmul.f32 %v717_v46, %v894_v29  ;;  %vm322_vm4 = vmor %vm320_vm3, %vm321_vm2  ;;  %v346_v63 = vor.u32 1.1754944e-38, %v345_v57  ;;  %vm344_vm9 = vcmp.eq.f32.partialorder %v343_v59, 8.507059e+37  ;;  %vm360_vm10 = vweird.f32 %v717_v46 }
 0x196   :  { %v317_v45 = vsub.f32 1.0, %v316_v42  ;;  %vm361_vm12 = vmor %vm359_vm11, %vm360_vm10 }
 0x197   :  { %v356_v60 = vsub.f32 1.0, %v355_v53 }
 0x198   :  { %v318_v47 = vmul.f32 %v715_v41, %v317_v45 }
 0x199   :  { %v719_v49 = vpop.eup %718  ;;  %v357_v4 = vmul.f32 %v717_v46, %v356_v60 }
 0x19a   :  { %v335_v51 = vmul.f32 %v719_v49, %v333_v37  ;;  %v319_v52 = vadd.f32 %v715_v41, %v318_v47  ;;  %vm340_vm5 = vweird.f32 %v719_v49  ;;  %v721_v3 = vpop.eup %720  ;;  %v585_v47 = vperm.slane %v695_v20, 2 }
 0x19b   :  { %vm341_vm8 = vmor %vm339_vm6, %vm340_vm5  ;;  %v358_v9 = vadd.f32 %v717_v46, %v357_v4 }
 0x19c   :  { %v336_v55 = vsub.f32 1.0, %v335_v51  ;;  %v323_v58 = vsel %vm322_vm4, %v715_v41, %v319_v52 }
 0x19d   :  { %v328_v1 = vsel %vm325_vm7, %v327_v61, %v323_v58  ;;  %v362_v12 = vsel %vm361_vm12, %v717_v46, %v358_v9 }
 0x19e   :  { %v337_v48 = vmul.f32 %v719_v49, %v336_v55  ;;  %v370_v7 = vmul.f32 %v721_v3, %v328_v1  ;;  %v367_v15 = vsel %vm364_vm13, %v366_v13, %v362_v12 }
 0x1a0   :  { %v338_v62 = vadd.f32 %v719_v49, %v337_v48 }
 0x1a2   :  { %v342_v2 = vsel %vm341_vm8, %v719_v49, %v338_v62 }
 0x1a3   :  { %v347_v5 = vsel %vm344_vm9, %v346_v63, %v342_v2 }
 0x1a4   :  { %v369_v6 = vmul.f32 %v347_v5, %v98_v0 }
 0x1a6   :  { %v371_v8 = vadd.f32 %v370_v7, %v369_v6 }
 0x1a8   :  { %722 = vtanh.f32 %v371_v8  ;;  %375 = vst.msk [vmem:[%s943_s8] sm:$0xff] %vm73_vm0, %v371_v8 }
 0x1ae   :  { %v723_v14 = vpop.eup %722 }
 0x1af   :  { %v373_v16 = vmul.f32 %v723_v14, %v367_v15  ;;  %v686_v3 = vld [vmem:[%s937_s2 + $0x8] sm:$0xff] }
 0x1b1   :  { %374 = vst.msk [vmem:[%s942_s7] sm:$0xff] %vm73_vm0, %v373_v16  ;;  %691 = vmatmul.msk.f32.vlgmr.msrb.gmra.mxu1 %vm73_vm0, %v373_v16  ;;  %692 = vmatmul.msk.f32.vlgmr.msrb.gmra.mxu2 %vm73_vm0, %v373_v16 }
 0x1b2   :  { %693 = vmatmul.msk.f32.vlgmr.msrb.gmra.mxu3 %vm73_vm0, %v373_v16  ;;  %694 = vmatmul.msk.f32.vlgmr.msra.gmra.mxu0 %vm73_vm0, %v373_v16 }
 0x22e   :  { %v517_v22 = vpop.f32.mrf.mxu1 }
 0x22f   :  { %v518_v24 = vadd.f32 %v517_v22, %v434_v17  ;;  %v577_v25 = vpop.f32.mrf.mxu0 }
 0x230   :  { %v578_v26 = vadd.f32 %v577_v25, %v494_v18 }
 0x231   :  { %v591_v27 = vadd.f32 %v583_v21, %v518_v24 }
 0x232   :  { %v594_v28 = vadd.f32 %v586_v23, %v578_v26 }
 0x233   :  { %v696_v29 = vmul.f32 -1.442695, %v591_v27 }
 0x234   :  { %v698_v31 = vmul.f32 -1.442695, %v594_v28  ;;  %v537_v32 = vpop.f32.mrf.mxu2 }
 0x235   :  { %724 = vpow2.f32 %v696_v29  ;;  %v538_v33 = vadd.f32 %v537_v32, %v454_v19  ;;  %v557_v43 = vpop.f32.mrf.mxu3 }
 0x236   :  { %726 = vpow2.f32 %v698_v31  ;;  %v558_v46 = vadd.f32 %v557_v43, %v474_v35 }
 0x237   :  { %v592_v34 = vadd.f32 %v584_v30, %v538_v33 }
 0x238   :  { %v593_v53 = vadd.f32 %v585_v47, %v558_v46 }
 0x239   :  { %v697_v36 = vmul.f32 -1.442695, %v592_v34 }
 0x23b   :  { %v725_v37 = vpop.eup %724  ;;  %728 = vpow2.f32 %v697_v36 }
 0x23c   :  { %v727_v38 = vpop.eup %726  ;;  %v598_v39 = vadd.f32 1.0, %v725_v37 }
 0x23d   :  { %v637_v40 = vadd.f32 1.0, %v727_v38 }
 0x23e   :  { %730 = vrcp.f32 %v598_v39  ;;  %v610_v57 = vand.u32 2147483648, %v598_v39  ;;  %vm604_vm15 = vweird.f32 %v598_v39  ;;  %v608_v58 = vand.u32 2147483647, %v598_v39 }
 0x23f   :  { %732 = vrcp.f32 %v637_v40  ;;  %v649_v13 = vand.u32 2147483648, %v637_v40  ;;  %vm643_vm8 = vweird.f32 %v637_v40  ;;  %v647_v14 = vand.u32 2147483647, %v637_v40 }
 0x240   :  { %v611_v0 = vor.u32 1.1754944e-38, %v610_v57  ;;  %vm609_vm4 = vcmp.eq.f32.partialorder %v608_v58, 8.507059e+37 }
 0x241   :  { %v729_v41 = vpop.eup %728  ;;  %v650_v16 = vor.u32 1.1754944e-38, %v649_v13  ;;  %vm648_vm10 = vcmp.eq.f32.partialorder %v647_v14, 8.507059e+37 }
 0x242   :  { %v617_v42 = vadd.f32 1.0, %v729_v41 }
 0x244   :  { %v731_v44 = vpop.eup %730  ;;  %734 = vrcp.f32 %v617_v42  ;;  %v629_v59 = vand.u32 2147483648, %v617_v42  ;;  %v627_v62 = vand.u32 2147483647, %v617_v42  ;;  %vm623_vm3 = vweird.f32 %v617_v42 }
 0x245   :  { %v600_v45 = vmul.f32 %v731_v44, %v598_v39  ;;  %v733_v50 = vpop.eup %732  ;;  %vm605_vm14 = vweird.f32 %v731_v44  ;;  %736 = vtanh.f32 %v593_v53 }
 0x246   :  { %v639_v56 = vmul.f32 %v733_v50, %v637_v40  ;;  %vm606_vm1 = vmor %vm604_vm15, %vm605_vm14  ;;  %v630_v2 = vor.u32 1.1754944e-38, %v629_v59  ;;  %vm628_vm6 = vcmp.eq.f32.partialorder %v627_v62, 8.507059e+37  ;;  %vm644_vm7 = vweird.f32 %v733_v50 }
 0x247   :  { %v601_v49 = vsub.f32 1.0, %v600_v45  ;;  %vm645_vm9 = vmor %vm643_vm8, %vm644_vm7 }
 0x248   :  { %v640_v63 = vsub.f32 1.0, %v639_v56 }
 0x249   :  { %v602_v51 = vmul.f32 %v731_v44, %v601_v49 }
 0x24a   :  { %v735_v52 = vpop.eup %734  ;;  %v641_v7 = vmul.f32 %v733_v50, %v640_v63 }
 0x24b   :  { %v619_v54 = vmul.f32 %v735_v52, %v617_v42  ;;  %v603_v55 = vadd.f32 %v731_v44, %v602_v51  ;;  %vm624_vm2 = vweird.f32 %v735_v52  ;;  %v737_v6 = vpop.eup %736 }
 0x24c   :  { %vm625_vm5 = vmor %vm623_vm3, %vm624_vm2  ;;  %v642_v12 = vadd.f32 %v733_v50, %v641_v7 }
 0x24d   :  { %v620_v48 = vsub.f32 1.0, %v619_v54  ;;  %v607_v61 = vsel %vm606_vm1, %v731_v44, %v603_v55 }
 0x24e   :  { %v612_v4 = vsel %vm609_vm4, %v611_v0, %v607_v61  ;;  %v646_v15 = vsel %vm645_vm9, %v733_v50, %v642_v12 }
 0x24f   :  { %v621_v60 = vmul.f32 %v735_v52, %v620_v48  ;;  %v654_v10 = vmul.f32 %v737_v6, %v612_v4  ;;  %v651_v18 = vsel %vm648_vm10, %v650_v16, %v646_v15 }
 0x251   :  { %v622_v1 = vadd.f32 %v735_v52, %v621_v60 }
 0x253   :  { %v626_v5 = vsel %vm625_vm5, %v735_v52, %v622_v1 }
 0x254   :  { %v631_v8 = vsel %vm628_vm6, %v630_v2, %v626_v5 }
 0x255   :  { %v653_v9 = vmul.f32 %v686_v3, %v631_v8 }
 0x257   :  { %v655_v11 = vadd.f32 %v654_v10, %v653_v9 }
 0x259   :  { %738 = vtanh.f32 %v655_v11  ;;  %700 = vst.msk [vmem:[%s943_s8 + $0x8] sm:$0xff] %vm73_vm0, %v655_v11 }
 0x25f   :  { %v739_v17 = vpop.eup %738 }
 0x260   :  { %v657_v19 = vmul.f32 %v739_v17, %v651_v18 }
 0x262   :  { %699 = vst.msk [vmem:[%s942_s7 + $0x8] sm:$0xff] %vm73_vm0, %v657_v19 }
 0x263   :  { %670 = vsyncpa [#allocation3], 1 }
 0x264   :  { %671 = vsyncpa [#allocation5], 1 }

</bundles_post_ra>
